<compile_context>
chip_gen: v5e
topology: v5e:2x2
jax: 0.10.0
libtpu: 0.0.40
codegen_flags: <defaults>
</compile_context>

<pallas_src>
import functools

import jax
import jax.numpy as jnp
from jax.experimental import pallas as pl
from jax.experimental.pallas import tpu as pltpu


def _round_up(x: int, m: int) -> int:
    return (x + m - 1) // m * m


def _sublane_pack(*dtypes) -> int:
    """Minimum row (sublane) multiple for the narrowest dtype involved."""
    pack = 8
    for dt in dtypes:
        pack = max(pack, 32 // jnp.dtype(dt).itemsize)
    return pack


def _physical_vmem_bytes() -> int:
    try:
        return int(pltpu.get_tpu_info().vmem_capacity_bytes)
    except Exception:
        return 64 << 20  # conservative: v7x per-TensorCore VMEM


def pad_vocab_weight(w_t, multiple: int = 128):
    """Pad the stored (H, V) weight once (call at parameter-setup time)."""
    h, v = w_t.shape
    vp = _round_up(v, multiple)
    if vp == v:
        return w_t
    return jnp.pad(w_t, ((0, 0), (0, vp - v)))


def gpt_lm_head_kernel(x_ref, gamma_ref, beta_ref, w_ref, o_ref, ln_ref, *,
                       eps, ln_chunk):
    # x_ref:     (tm, H)   row tile of hidden states
    # gamma_ref: (1, H)    LayerNorm weight
    # beta_ref:  (1, H)    LayerNorm bias
    # w_ref:     (H, tv)   vocab-projection weight tile (transposed Linear W)
    # o_ref:     (tm, tv)  output logits tile
    # ln_ref:    (tm, H)   VMEM scratch with LayerNorm'd rows (>= bf16)

    # LayerNorm hoisted out of the vocab loop: only at the first vocab tile of
    # each row tile. Computed in <=256-row chunks so the f32 temporaries stay
    # small even for large row tiles (v7x 64 MiB VMEM).
    @pl.when(pl.program_id(2) == 0)
    def _compute_layernorm():
        g = gamma_ref[...].astype(jnp.float32)
        b = beta_ref[...].astype(jnp.float32)
        n_chunks = ln_ref.shape[0] // ln_chunk

        def body(c, carry):
            r0 = pl.multiple_of(c * ln_chunk, ln_chunk)
            xc32 = x_ref[pl.ds(r0, ln_chunk), :].astype(jnp.float32)
            mean = jnp.mean(xc32, axis=-1, keepdims=True)
            cen = xc32 - mean
            var = jnp.mean(cen * cen, axis=-1, keepdims=True)  # biased (torch)
            inv = jax.lax.rsqrt(var + eps)
            ln_ref[pl.ds(r0, ln_chunk), :] = (cen * inv * g + b).astype(
                ln_ref.dtype)
            return carry

        jax.lax.fori_loop(0, n_chunks, body, 0, unroll=(n_chunks <= 4))

    # Inner loop: pure MXU matmul with f32 accumulation.
    o_ref[...] = jnp.dot(
        ln_ref[...], w_ref[...], preferred_element_type=jnp.float32
    ).astype(o_ref.dtype)


def gpt_lm_head(x, gamma, beta, w_t, *, eps=1e-5, out_dtype=None,
                tm=None, tv=None, vocab_size=None):
    """x: (B, S, H); gamma/beta: (H,); w_t: (H, V). Returns (B, S, V) logits.

    w_t should be bf16 for production (halves the dominant HBM weight stream);
    fp8 weights on v7x keep bf16 activations. Pass out_dtype=jnp.bfloat16 to
    halve the logit write stream. Pre-pad the stored weight with
    pad_vocab_weight() once instead of relying on the per-call fallback pad.
    """
    B, S, H = x.shape
    V_stored = w_t.shape[1]
    V = int(vocab_size) if vocab_size is not None else V_stored
    M = B * S
    out_dtype = jnp.dtype(out_dtype) if out_dtype is not None else jnp.dtype(x.dtype)

    w_dt = jnp.dtype(w_t.dtype)
    # Keep activations at bf16 or wider even if weights are fp8/int8.
    ln_dtype = w_dt if w_dt.itemsize >= 2 else jnp.dtype(jnp.bfloat16)

    vmem_cap = _physical_vmem_bytes()
    big_vmem = vmem_cap >= (96 << 20)           # v5e/v6e (128 MiB) vs v7x (64 MiB)
    if tm is None:
        tm = 1024 if big_vmem else 512
    if tv is None:
        tv = 1024 if big_vmem else 512

    # Respect sublane packing of the narrowest participating dtype.
    pack = _sublane_pack(x.dtype, ln_dtype, out_dtype)
    tm_eff = _round_up(min(tm, _round_up(M, pack)), pack)
    tv_eff = _round_up(min(tv, _round_up(V_stored, 128)), 128)

    xb = jnp.dtype(x.dtype).itemsize
    wb = w_dt.itemsize
    lb = jnp.dtype(ln_dtype).itemsize
    ob = out_dtype.itemsize

    def ln_chunk_for(tm_):
        if tm_ <= 256:
            return tm_
        for c in (256, 128):
            if tm_ % c == 0:
                return c
        return tm_

    def vmem_need(tm_, tv_):
        return (2 * H * tv_ * wb                 # double-buffered weight tiles
                + 2 * tm_ * H * xb               # double-buffered x tiles
                + 2 * tm_ * tv_ * ob             # double-buffered output tiles
                + tm_ * H * lb                   # LN scratch
                + 3 * ln_chunk_for(tm_) * H * 4  # f32 LN temporaries
                + 8 * H * 4)                     # gamma/beta

    budget = vmem_cap - (8 << 20)                # leave headroom for compiler
    while vmem_need(tm_eff, tv_eff) > budget:
        if tm_eff > 256:
            tm_eff = _round_up(tm_eff // 2, pack)
        elif tv_eff > 128:
            tv_eff = _round_up(tv_eff // 2, 128)
        else:
            break

    Mp = _round_up(M, tm_eff)
    Vp = _round_up(V_stored, tv_eff)

    x2d = x.reshape(M, H)
    if Mp != M:
        x2d = jnp.pad(x2d, ((0, Mp - M), (0, 0)))
    w_p = w_t
    if Vp != V_stored:
        # Fallback only: this re-streams the full (H, V) weight every call.
        # Pre-pad once with pad_vocab_weight() (GPT vocabs are usually already
        # padded to a multiple of 128, e.g. 50304).
        w_p = jnp.pad(w_t, ((0, 0), (0, Vp - V_stored)))
    gamma2d = gamma.reshape(1, H)
    beta2d = beta.reshape(1, H)

    grid_i = Mp // tm_eff
    grid_j_total = Vp // tv_eff
    # Decode shapes (single row tile): split the vocab range across a leading
    # parallel axis so both v7x TensorCores get work.
    nc = 2 if (grid_i == 1 and grid_j_total >= 2 and grid_j_total % 2 == 0) else 1
    grid_j = grid_j_total // nc
    grid = (nc, grid_i, grid_j)

    ln_chunk = ln_chunk_for(tm_eff)
    need = vmem_need(tm_eff, tv_eff)
    vmem_limit = int(min(max(need * 5 // 4, 32 << 20), vmem_cap - (4 << 20)))

    cost = pl.CostEstimate(
        flops=2 * M * H * V,
        transcendentals=M,  # one rsqrt per row
        bytes_accessed=(M * H * xb + grid_i * H * Vp * wb + M * Vp * ob),
    )

    out2d = pl.pallas_call(
        functools.partial(gpt_lm_head_kernel, eps=eps, ln_chunk=ln_chunk),
        out_shape=jax.ShapeDtypeStruct((Mp, Vp), out_dtype),
        grid_spec=pltpu.PrefetchScalarGridSpec(
            num_scalar_prefetch=0,
            grid=grid,
            in_specs=[
                pl.BlockSpec((tm_eff, H), lambda c, i, j: (i, 0)),   # x rows
                pl.BlockSpec((1, H), lambda c, i, j: (0, 0)),        # gamma
                pl.BlockSpec((1, H), lambda c, i, j: (0, 0)),        # beta
                pl.BlockSpec((H, tv_eff),                            # weight tile
                             lambda c, i, j, gj=grid_j: (0, c * gj + j)),
            ],
            out_specs=pl.BlockSpec((tm_eff, tv_eff),
                                   lambda c, i, j, gj=grid_j: (i, c * gj + j)),
            scratch_shapes=[pltpu.VMEM((tm_eff, H), ln_dtype)],      # hoisted LN
        ),
        compiler_params=pltpu.CompilerParams(
            # vocab axis carries the LN scratch -> "arbitrary"; core-split and
            # row axes are "parallel" for megacore sharding.
            dimension_semantics=("parallel", "parallel", "arbitrary"),
            vmem_limit_bytes=vmem_limit,
        ),
        cost_estimate=cost,
    )(x2d, gamma2d, beta2d, w_p)

    return out2d[:M, :V].reshape(B, S, V)


def reference(x, gamma, beta, w_t, eps=1e-5):
    xf = x.astype(jnp.float32)
    mean = jnp.mean(xf, axis=-1, keepdims=True)
    var = jnp.mean((xf - mean) ** 2, axis=-1, keepdims=True)
    ln = (xf - mean) * jax.lax.rsqrt(var + eps) * gamma + beta
    return jnp.einsum("bsh,hv->bsv", ln, w_t.astype(jnp.float32))


if __name__ == "__main__":
    eps = 1e-5
    key = jax.random.PRNGKey(0)
    kx, kg, kb, kw = jax.random.split(key, 4)

    # Small config: batch=2, seq=8, hidden=32, vocab=256 (tile-aligned path).
    B, S, H, V = 2, 8, 32, 256
    x = jax.random.normal(kx, (B, S, H), dtype=jnp.float32)
    gamma = 1.0 + 0.1 * jax.random.normal(kg, (H,), dtype=jnp.float32)
    beta = 0.1 * jax.random.normal(kb, (H,), dtype=jnp.float32)
    # nn.Linear weight is (V, H); kernel takes it transposed as (H, V).
    w = 0.02 * jax.random.normal(kw, (V, H), dtype=jnp.float32)
    w_t = w.T

    ref = reference(x, gamma, beta, w_t, eps=eps)

    # 1) f32 path (exact-ish check).
    out = jax.block_until_ready(gpt_lm_head(x, gamma, beta, w_t, eps=eps))
    assert out.shape == (B, S, V), out.shape
    assert jnp.allclose(out, ref.astype(out.dtype), atol=1e-4, rtol=1e-4), float(
        jnp.max(jnp.abs(out - ref)))

    # 2) Recommended production config: bf16 weights + bf16 logits.
    out_bf = jax.block_until_ready(
        gpt_lm_head(x, gamma, beta, w_t.astype(jnp.bfloat16), eps=eps,
                    out_dtype=jnp.bfloat16))
    assert out_bf.dtype == jnp.bfloat16
    assert jnp.allclose(out_bf.astype(jnp.float32), ref, atol=5e-3, rtol=5e-2), float(
        jnp.max(jnp.abs(out_bf.astype(jnp.float32) - ref)))

    # 3) Ragged M / V with the weight pre-padded ONCE outside the call.
    B2, S2, V2 = 1, 5, 200
    x2 = jax.random.normal(kx, (B2, S2, H), dtype=jnp.float32)
    w2 = 0.02 * jax.random.normal(kw, (V2, H), dtype=jnp.float32)
    w2_t_pad = pad_vocab_weight(w2.T)
    out2 = jax.block_until_ready(
        gpt_lm_head(x2, gamma, beta, w2_t_pad, eps=eps, vocab_size=V2))
    ref2 = reference(x2, gamma, beta, w2.T, eps=eps)
    assert out2.shape == (B2, S2, V2), out2.shape
    assert jnp.allclose(out2, ref2.astype(out2.dtype), atol=1e-4, rtol=1e-4), float(
        jnp.max(jnp.abs(out2 - ref2)))

    # 4) Decode-like shape (single row tile) exercising the megacore vocab
    #    split (leading parallel axis of size 2).
    B3, S3 = 1, 4
    x3 = jax.random.normal(kx, (B3, S3, H), dtype=jnp.float32)
    out3 = jax.block_until_ready(gpt_lm_head(x3, gamma, beta, w_t, eps=eps, tv=128))
    ref3 = reference(x3, gamma, beta, w_t, eps=eps)
    assert out3.shape == (B3, S3, V), out3.shape
    assert jnp.allclose(out3, ref3.astype(out3.dtype), atol=1e-4, rtol=1e-4), float(
        jnp.max(jnp.abs(out3 - ref3)))

    print("KERNEL_OK")
</pallas_src>

<mosaic_0001>
module attributes {stable_mosaic.version = 11 : i64} {
  func.func @gpt_lm_head_kernel(%arg0: i32, %arg1: i32, %arg2: i32, %arg3: memref<16x32xf32, #tpu.memory_space<vmem>>, %arg4: memref<1x32xf32, #tpu.memory_space<vmem>>, %arg5: memref<1x32xf32, #tpu.memory_space<vmem>>, %arg6: memref<32x256xf32, #tpu.memory_space<vmem>>, %arg7: memref<16x256xf32, #tpu.memory_space<vmem>>, %arg8: memref<16x32xf32, #tpu.memory_space<vmem>>) attributes {dimension_semantics = [#tpu.dimension_semantics<parallel>, #tpu.dimension_semantics<parallel>, #tpu.dimension_semantics<arbitrary>], iteration_bounds = array<i64: 1, 1, 1>, scalar_prefetch = 0 : i64, scratch_operands = 1 : i64, tpu.core_type = #tpu.core_type<tc>, window_params = [{transform_indices = @transform_0, window_bounds = array<i64: 16, 32>}, {pipeline_mode = #tpu.pipeline_mode<synchronous>, transform_indices = @transform_1, window_bounds = array<i64: 1, 32>}, {pipeline_mode = #tpu.pipeline_mode<synchronous>, transform_indices = @transform_2, window_bounds = array<i64: 1, 32>}, {transform_indices = @transform_3, window_bounds = array<i64: 32, 256>}, {transform_indices = @transform_4, window_bounds = array<i64: 16, 256>}]} {
    %c0_i32 = arith.constant 0 : i32
    %0 = arith.cmpi eq, %arg2, %c0_i32 : i32
    %1 = arith.extui %0 : i1 to i32
    %c0_i32_0 = arith.constant 0 : i32
    %2 = arith.cmpi ne, %1, %c0_i32_0 : i32
    scf.if %2 {
      %c0_6 = arith.constant 0 : index
      %c0_7 = arith.constant 0 : index
      %7 = vector.load %arg4[%c0_6, %c0_7] : memref<1x32xf32, #tpu.memory_space<vmem>>, vector<1x32xf32>
      %c0_8 = arith.constant 0 : index
      %c0_9 = arith.constant 0 : index
      %8 = vector.load %arg5[%c0_8, %c0_9] : memref<1x32xf32, #tpu.memory_space<vmem>>, vector<1x32xf32>
      %c0_i32_10 = arith.constant 0 : i32
      %c16_i32 = arith.constant 16 : i32
      %9 = arith.muli %c0_i32_10, %c16_i32 : i32
      %10 = tpu.assume_multiple %9, 16 : i32
      %11 = arith.index_cast %10 : i32 to index
      %c0_11 = arith.constant 0 : index
      %12 = vector.load %arg3[%11, %c0_11] : memref<16x32xf32, #tpu.memory_space<vmem>>, vector<16x32xf32>
      %cst_12 = arith.constant dense<0.000000e+00> : vector<16xf32>
      %13 = vector.multi_reduction <add>, %12, %cst_12 [1] : vector<16x32xf32> to vector<16xf32>
      %14 = vector.shape_cast %13 : vector<16xf32> to vector<16x1xf32>
      %cst_13 = arith.constant 3.200000e+01 : f32
      %15 = vector.broadcast %cst_13 : f32 to vector<16x1xf32>
      %16 = arith.divf %14, %15 : vector<16x1xf32>
      %17 = vector.broadcast %16 : vector<16x1xf32> to vector<16x32xf32>
      %18 = arith.subf %12, %17 : vector<16x32xf32>
      %19 = arith.mulf %18, %18 : vector<16x32xf32>
      %cst_14 = arith.constant dense<0.000000e+00> : vector<16xf32>
      %20 = vector.multi_reduction <add>, %19, %cst_14 [1] : vector<16x32xf32> to vector<16xf32>
      %21 = vector.shape_cast %20 : vector<16xf32> to vector<16x1xf32>
      %cst_15 = arith.constant 3.200000e+01 : f32
      %22 = vector.broadcast %cst_15 : f32 to vector<16x1xf32>
      %23 = arith.divf %21, %22 : vector<16x1xf32>
      %cst_16 = arith.constant 9.99999974E-6 : f32
      %24 = vector.broadcast %cst_16 : f32 to vector<16x1xf32>
      %25 = arith.addf %23, %24 : vector<16x1xf32>
      %26 = math.rsqrt %25 : vector<16x1xf32>
      %27 = vector.broadcast %26 : vector<16x1xf32> to vector<16x32xf32>
      %28 = arith.mulf %18, %27 : vector<16x32xf32>
      %29 = vector.broadcast %7 : vector<1x32xf32> to vector<16x32xf32>
      %30 = arith.mulf %28, %29 : vector<16x32xf32>
      %31 = vector.broadcast %8 : vector<1x32xf32> to vector<16x32xf32>
      %32 = arith.addf %30, %31 : vector<16x32xf32>
      %33 = arith.index_cast %10 : i32 to index
      %c0_17 = arith.constant 0 : index
      %34 = vector.load %arg8[%33, %c0_17] : memref<16x32xf32, #tpu.memory_space<vmem>>, vector<16x32xf32>
      tpu.vector_store %arg8[%33, %c0_17], %32 {strides = array<i32>} : memref<16x32xf32, #tpu.memory_space<vmem>>, vector<16x32xf32>,
      %c1_i32 = arith.constant 1 : i32
    } else {
    }
    %c0 = arith.constant 0 : index
    %c0_1 = arith.constant 0 : index
    %3 = vector.load %arg8[%c0, %c0_1] : memref<16x32xf32, #tpu.memory_space<vmem>>, vector<16x32xf32>
    %c0_2 = arith.constant 0 : index
    %c0_3 = arith.constant 0 : index
    %4 = vector.load %arg6[%c0_2, %c0_3] : memref<32x256xf32, #tpu.memory_space<vmem>>, vector<32x256xf32>
    %cst = arith.constant dense<0.000000e+00> : vector<16x256xf32>
    %5 = tpu.matmul %3, %4, %cst {dimension_numbers = #tpu.dot_dimension_numbers<[1], [0], [0], [1], [0, 0, 1, 1], [], []>} : vector<16x32xf32>, vector<32x256xf32>, vector<16x256xf32> -> vector<16x256xf32>
    %c0_4 = arith.constant 0 : index
    %c0_5 = arith.constant 0 : index
    %6 = vector.load %arg7[%c0_4, %c0_5] : memref<16x256xf32, #tpu.memory_space<vmem>>, vector<16x256xf32>
    tpu.vector_store %arg7[%c0_4, %c0_5], %5 {strides = array<i32>} : memref<16x256xf32, #tpu.memory_space<vmem>>, vector<16x256xf32>,
    return
  }
  func.func @transform_0(%arg0: i32, %arg1: i32, %arg2: i32) -> (i32, i32) {
    %c0_i32 = arith.constant 0 : i32
    %c0_i32_0 = arith.constant 0 : i32
    return %arg1, %c0_i32 : i32, i32
  }
  func.func @transform_1(%arg0: i32, %arg1: i32, %arg2: i32) -> (i32, i32) {
    %c0_i32 = arith.constant 0 : i32
    %c0_i32_0 = arith.constant 0 : i32
    %c0_i32_1 = arith.constant 0 : i32
    return %c0_i32, %c0_i32_0 : i32, i32
  }
  func.func @transform_2(%arg0: i32, %arg1: i32, %arg2: i32) -> (i32, i32) {
    %c0_i32 = arith.constant 0 : i32
    %c0_i32_0 = arith.constant 0 : i32
    %c0_i32_1 = arith.constant 0 : i32
    return %c0_i32, %c0_i32_0 : i32, i32
  }
  func.func @transform_3(%arg0: i32, %arg1: i32, %arg2: i32) -> (i32, i32) {
    %c1_i32 = arith.constant 1 : i32
    %0 = arith.muli %arg0, %c1_i32 : i32
    %1 = arith.addi %0, %arg2 : i32
    %c0_i32 = arith.constant 0 : i32
    %c0_i32_0 = arith.constant 0 : i32
    return %c0_i32, %1 : i32, i32
  }
  func.func @transform_4(%arg0: i32, %arg1: i32, %arg2: i32) -> (i32, i32) {
    %c1_i32 = arith.constant 1 : i32
    %0 = arith.muli %arg0, %c1_i32 : i32
    %1 = arith.addi %0, %arg2 : i32
    %c0_i32 = arith.constant 0 : i32
    return %arg1, %1 : i32, i32
  }
}

</mosaic_0001>

<bundles_post_ra>
// kernel: tpu_custom_call.1
= control target key start
LH: loop header
LB: loop body
LE: loop exit
PB: predicated region body
PF: predicated region fallthrough
CT: control target
= control target key end

     0   :  { %9 = vsyncpa [#allocation4], 0  ;;  %s435_s0 = inlined_call_operand.hbm [shape: f32[16,32], index: 0, kind: input, shape index: {}]   ;;  %s436_s1 = inlined_call_operand.hbm [shape: f32[1,32], index: 1, kind: input, shape index: {}]   ;;  %s437_s2 = inlined_call_operand.vmem [shape: f32[1,32], index: 2, kind: input, shape index: {}]   ;;  %s438_s3 = inlined_call_operand.hbm [shape: f32[32,256], index: 3, kind: input, shape index: {}]   ;;  %s439_s4 = inlined_call_operand.hbm [shape: f32[16,256], index: 4, kind: output, shape index: {}]  }
   0x1   :  { %10 = vsyncpa [#allocation7], 0  ;;  %s30_s17 = sshll.u32 %s436_s1, 4  ;;  %s31_s17 = int_to_ptr.hbm [resolvable:$true] %s30_s17 }
   0x2   :  { %11 = vsyncpa [#allocation5], 0  ;;  %s365_s18 = smov [#allocation6]   ;;  %s16_s22 = sshll.u32 %s435_s0, 4  ;;  %s17_s22 = int_to_ptr.hbm [resolvable:$true] %s16_s22 }
   0x3   :  { %s32_s19 = sshll.u32 %s365_s18, 4  ;;  %s366_s23 = smov [#allocation3]   ;;  %s33_s19 = int_to_ptr.vmem [resolvable:$true] %s32_s19 }
   0x4   :  { %35 = dma.hbm_to_vmem [thread:$0]  %s31_s17, 16, %s33_s19, [#allocation7]  }
   0x5   :  { %s18_s24 = sshll.u32 %s366_s23, 4  ;;  %s367_s25 = smov 128   ;;  %s19_s24 = int_to_ptr.vmem [resolvable:$true] %s18_s24 }
   0x6   :  { %s368_s26 = smov 8   ;;  %s46_s1 = sshll.u32 %s438_s3, 4  ;;  %s47_s1 = int_to_ptr.hbm [resolvable:$true] %s46_s1 }
   0x7   :  { %24 = dma.hbm_to_vmem [thread:$0]  %s17_s22, 256, %s19_s24, [#allocation4], %s367_s25, %s367_s25, %s368_s26  }
   0x8   :  { %s369_s29 = smov [#allocation8]   ;;  %s370_s5 = smov 256  }
   0x9   :  { %s48_s30 = sshll.u32 %s369_s29, 4  ;;  %s371_s6 = smov 16   ;;  %s49_s30 = int_to_ptr.vmem [resolvable:$true] %s48_s30 }
   0xa   :  { %54 = dma.hbm_to_vmem [thread:$0]  %s47_s1, 1024, %s49_s30, [#allocation7], %s370_s5, %s370_s5, %s371_s6  }
   0xb   :  { %359 = dma.done.wait [#allocation4], 256  }
   0xc   :  { %360 = vsyncadd [#allocation4], 4294967040 }
   0xd   :  { %361 = dma.done.wait [#allocation7], 1040  }
   0xe   :  { %362 = vsyncadd [#allocation7], 4294966256  ;;  %vm79_vm0 = vcmask 261120   ;;  %v78_v0 = vld [vmem:[#allocation3 + $0x8] sm:$0xff]  ;;  %v77_v2 = vld [vmem:[#allocation3] sm:$0xff]  ;;  %v372_v4 = vmov 32.0  }
   0xf   :  { %v83_v1 = vsel %vm79_vm0, %v78_v0, 0.0  ;;  %v80_v3 = vsel %vm79_vm0, %v77_v2, 0.0  ;;  %257 = vrcp.f32 %v372_v4  ;;  %v151_v21 = vld [vmem:[#allocation8 + $0x30] sm:$0xff]  ;;  %v152_v22 = vld [vmem:[#allocation8 + $0x38] sm:$0xff]  ;;  %v149_v23 = vld [vmem:[#allocation8 + $0x20] sm:$0xff]  ;;  %s220_s10 = sshll.u32 %s439_s4, 4  ;;  %s221_s10 = int_to_ptr.hbm [resolvable:$true] %s220_s10 }
  0x10   :  { %84 = vadd.xlane.f32.xlu0 %v83_v1  ;;  %238 = vmatpush.msra.mxu2 %v151_v21  ;;  %v150_v24 = vld [vmem:[#allocation8 + $0x28] sm:$0xff]  ;;  %v147_v27 = vld [vmem:[#allocation8 + $0x10] sm:$0xff]  ;;  %v148_v28 = vld [vmem:[#allocation8 + $0x18] sm:$0xff] }
  0x11   :  { %242 = vmatpush.msra.mxu3 %v152_v22  ;;  %172 = vmatpush.msra.mxu0 %v151_v21  ;;  %v145_v30 = vld [vmem:[#allocation8] sm:$0xff]  ;;  %v146_v31 = vld [vmem:[#allocation8 + $0x8] sm:$0xff]  ;;  %v255_v43 = vld [vmem:[#allocation6] ss:$0 sm:$0xff] }
  0x12   :  { %195 = vmatpush.msra.mxu1 %v152_v22  ;;  %239 = vmatpush.msra.mxu2 %v149_v23  ;;  %v256_v47 = vld [vmem:[%s437_s2] ss:$0 sm:$0xff]  ;;  %s373_s2 = smov [#allocation9]  }
  0x13   :  { %243 = vmatpush.msra.mxu3 %v150_v24  ;;  %173 = vmatpush.msra.mxu0 %v149_v23  ;;  %s218_s7 = sshll.u32 %s373_s2, 4  ;;  %s219_s7 = int_to_ptr.vmem [resolvable:$true] %s218_s7 }
  0x14   :  { %196 = vmatpush.msra.mxu1 %v150_v24  ;;  %240 = vmatpush.msra.mxu2 %v147_v27 }
  0x15   :  { %v258_v5 = vpop.eup %257  ;;  %244 = vmatpush.msra.mxu3 %v148_v28  ;;  %174 = vmatpush.msra.mxu0 %v147_v27 }
  0x16   :  { %v87_v6 = vmul.f32 32.0, %v258_v5  ;;  %vm91_vm1 = vweird.f32 %v258_v5  ;;  %197 = vmatpush.msra.mxu1 %v148_v28  ;;  %241 = vmatpush.msra.mxu2 %v145_v30 }
  0x17   :  { %245 = vmatpush.msra.mxu3 %v146_v31  ;;  %175 = vmatpush.msra.mxu0 %v145_v30 }
  0x18   :  { %81 = vadd.xlane.f32.xlu0 %v80_v3  ;;  %v88_v7 = vsub.f32 1.0, %v87_v6  ;;  %198 = vmatpush.msra.mxu1 %v146_v31 }
  0x1a   :  { %v89_v8 = vmul.f32 %v258_v5, %v88_v7 }
  0x1c   :  { %v90_v9 = vadd.f32 %v258_v5, %v89_v8 }
  0x1e   :  { %v92_v10 = vsel %vm91_vm1, %v258_v5, %v90_v9 }
  0x83   :  { %v85_v11 = vpop.xlane.xlu0 %84 }
  0x84   :  { %v94_v12 = vmul.f32 %v92_v10, %v85_v11 }
  0x86   :  { %v96_v13 = vsub.f32 %v78_v0, %v94_v12 }
  0x88   :  { %v98_v14 = vmul.f32 %v96_v13, %v96_v13 }
  0x8a   :  { %v102_v15 = vsel %vm79_vm0, %v98_v14, 0.0 }
  0x8b   :  { %103 = vadd.xlane.f32.xlu1 %v102_v15  ;;  %v82_v16 = vpop.xlane.xlu0 %81 }
  0x8c   :  { %v93_v17 = vmul.f32 %v92_v10, %v82_v16 }
  0x8e   :  { %v414_v18 = vsub.f32 %v77_v2, %v93_v17 }
  0x90   :  { %v97_v19 = vmul.f32 %v414_v18, %v414_v18 }
  0x92   :  { %v99_v20 = vsel %vm79_vm0, %v97_v19, 0.0 }
  0x93   :  { %100 = vadd.xlane.f32.xlu1 %v99_v20 }
  0xfe   :  { %v104_v25 = vpop.xlane.xlu1 %103 }
  0xff   :  { %v106_v26 = vmul.f32 %v104_v25, %v92_v10 }
 0x101   :  { %v108_v29 = vadd.f32 1e-05, %v106_v26 }
 0x103   :  { %259 = vrsqrt.f32 %v108_v29  ;;  %vm125_vm3 = vweird.f32 %v108_v29 }
 0x106   :  { %v101_v32 = vpop.xlane.xlu1 %100 }
 0x107   :  { %v105_v33 = vmul.f32 %v101_v32, %v92_v10 }
 0x109   :  { %v260_v34 = vpop.eup %259  ;;  %v107_v35 = vadd.f32 1e-05, %v105_v33 }
 0x10a   :  { %v120_v36 = vmul.f32 %v260_v34, %v108_v29  ;;  %vm126_vm2 = vweird.f32 %v260_v34 }
 0x10b   :  { %261 = vrsqrt.f32 %v107_v35  ;;  %vm127_vm4 = vmor %vm125_vm3, %vm126_vm2  ;;  %vm115_vm6 = vweird.f32 %v107_v35 }
 0x10c   :  { %v121_v37 = vmul.f32 %v260_v34, %v120_v36 }
 0x10e   :  { %v122_v38 = vmul.f32 0.5, %v121_v37 }
 0x110   :  { %v123_v39 = vsub.f32 1.5, %v122_v38 }
 0x111   :  { %v262_v40 = vpop.eup %261 }
 0x112   :  { %v124_v41 = vmul.f32 %v260_v34, %v123_v39  ;;  %v110_v42 = vmul.f32 %v262_v40, %v107_v35  ;;  %vm116_vm5 = vweird.f32 %v262_v40 }
 0x113   :  { %vm117_vm7 = vmor %vm115_vm6, %vm116_vm5 }
 0x114   :  { %v128_v44 = vsel %vm127_vm4, %v260_v34, %v124_v41  ;;  %v111_v45 = vmul.f32 %v262_v40, %v110_v42 }
 0x115   :  { %v130_v46 = vmul.f32 %v128_v44, %v96_v13 }
 0x116   :  { %v112_v48 = vmul.f32 0.5, %v111_v45 }
 0x117   :  { %v135_v49 = vmul.f32 %v255_v43, %v130_v46 }
 0x118   :  { %v113_v50 = vsub.f32 1.5, %v112_v48 }
 0x119   :  { %v140_v51 = vadd.f32 %v256_v47, %v135_v49 }
 0x11a   :  { %v114_v52 = vmul.f32 %v262_v40, %v113_v50 }
 0x11b   :  { %142 = vst.msk [vmem:[#allocation2 + $0x8] sm:$0xff] %vm79_vm0, %v140_v51 }
 0x11c   :  { %v118_v53 = vsel %vm117_vm7, %v262_v40, %v114_v52 }
 0x11d   :  { %v129_v54 = vmul.f32 %v118_v53, %v414_v18 }
 0x11f   :  { %v134_v55 = vmul.f32 %v255_v43, %v129_v54 }
 0x121   :  { %v139_v56 = vadd.f32 %v256_v47, %v134_v55 }
 0x122   :  { %v144_v57 = vld [vmem:[#allocation2 + $0x8] sm:$0xff] }
 0x123   :  { %141 = vst.msk [vmem:[#allocation2] sm:$0xff] %vm79_vm0, %v139_v56  ;;  %235 = vmatmul.msk.f32.vlgmr.msra.gmra.mxu2 %vm79_vm0, %v144_v57  ;;  %237 = vmatmul.msk.f32.vlgmr.msra.gmra.mxu3 %vm79_vm0, %v144_v57 }
 0x12a   :  { %v143_v58 = vld [vmem:[#allocation2] sm:$0xff] }
 0x12b   :  { %234 = vmatmul.msk.f32.vlgmr.msra.gmra.mxu0 %vm79_vm0, %v143_v58  ;;  %236 = vmatmul.msk.f32.vlgmr.msra.gmra.mxu1 %vm79_vm0, %v143_v58 }
 0x1a6   :  { %v180_v59 = vpop.f32.mrf.mxu2  ;;  %v203_v60 = vpop.f32.mrf.mxu3 }
 0x1a7   :  { %208 = vst [vmem:[#allocation9 + $0x10] sm:$0xff] %v180_v59 }
 0x1a8   :  { %209 = vst [vmem:[#allocation9 + $0x18] sm:$0xff] %v203_v60  ;;  %v177_v61 = vpop.f32.mrf.mxu0  ;;  %v200_v62 = vpop.f32.mrf.mxu1 }
 0x1a9   :  { %206 = vst [vmem:[#allocation9] sm:$0xff] %v177_v61 }
 0x1aa   :  { %207 = vst [vmem:[#allocation9 + $0x8] sm:$0xff] %v200_v62 }
 0x1ab   :  { %226 = dma.vmem_to_hbm [thread:$0]  %s219_s7, 512, %s221_s10, [#allocation5], %s370_s5, %s370_s5, %s371_s6  }
 0x1ac   :  { %363 = dma.done.wait [#allocation5], 512  }
 0x1ad   :  { %364 = vsyncadd [#allocation5], 4294966784 }
 0x1ae   :  { %231 = vsyncpa [#allocation4], 1 }
 0x1af   :  { %232 = vsyncpa [#allocation7], 1 }
 0x1b0   :  { %233 = vsyncpa [#allocation5], 1 }

</bundles_post_ra>
